<compile_context>
chip_gen: v5e
topology: v5e:2x2
jax: 0.10.0
libtpu: 0.0.40
codegen_flags: <defaults>
</compile_context>

<pallas_src>
import functools
import math

import jax
import jax.numpy as jnp
from jax.experimental import pallas as pl
from jax.experimental.pallas import tpu as pltpu


def _gelu(x, approximate):
    if approximate:
        # tanh approximation (EUP transcendental) -- opt-in only.
        c = math.sqrt(2.0 / math.pi)
        return 0.5 * x * (1.0 + jnp.tanh(c * (x + 0.044715 * x * x * x)))
    # Matches torch.nn.GELU() default (approximate='none'), erf-based.
    return 0.5 * x * (1.0 + jax.lax.erf(x * (1.0 / math.sqrt(2.0))))


def _round_up(x, m):
    return ((x + m - 1) // m) * m


def _tau_encoder_kernel(tau_ref, w1_ref, b1_ref, w2_ref, b2_ref, o_ref, *,
                        approximate):
    # tau_ref: (Tf, g)        g flat rows folded into lanes per folded row
    # w1_ref:  (g, g*H1)      block-diagonal kron(I_g, w1), VMEM-resident
    # b1_ref:  (1, g*H1)
    # w2_ref:  (g*H1, Ef)     block-diagonal kron(I_g, w2) (E padded to Ef/g)
    # b2_ref:  (1, Ef)
    # o_ref:   (Tf, Ef)       lane-dense output tile (Ef multiple of 128)
    h = jnp.dot(tau_ref[...], w1_ref[...], preferred_element_type=jnp.float32)
    h = _gelu(h + b1_ref[...], approximate)
    y = jnp.dot(h, w2_ref[...], preferred_element_type=jnp.float32)
    o_ref[...] = _gelu(y + b2_ref[...], approximate).astype(o_ref.dtype)


def _choose_tile_f(nf_raw, Ef):
    """Pick folded-row tile size (multiple of 8)."""
    # Live VMEM per folded row: double-buffered input block (lane-padded to
    # 128) + double-buffered output block (Ef lanes), f32.
    bytes_per_row = 2 * (128 + Ef) * 4
    vmem_budget = 24 * 1024 * 1024          # headroom under 32 MiB scoped / v7x
    tile_vmem = max(8, vmem_budget // bytes_per_row)
    # Target ~4 MiB output blocks to amortize the ~600-cycle per-step cost.
    tile_target = max(8, (4 * 1024 * 1024) // (Ef * 4))
    tile_f = min(tile_vmem, tile_target)
    # Keep >= ~4 grid steps (v7x two-TC sharding + pipeline overlap) when
    # the problem is large enough; otherwise one tile covers everything.
    quarter = _round_up(max(1, -(-nf_raw // 4)), 8)
    tile_f = min(tile_f, quarter)
    return max(8, (tile_f // 8) * 8)


def tau_position_encoder(tau, w1, b1, w2, b2, *,
                         out_dtype=jnp.float32, approximate_gelu=False):
    """tau: (B, D) float. Returns (B, D, E) in out_dtype (default float32)."""
    B, D = tau.shape
    H1 = w1.shape[1]
    E = w2.shape[1]
    N = B * D

    # Lane-folding / padding: the stored last dim is always a multiple of 128.
    if E < 128 and 128 % E == 0:
        g, E_pad = 128 // E, E
    else:
        g, E_pad = 1, _round_up(E, 128)
    Ef = g * E_pad
    Hf = g * H1

    nf_raw = -(-N // g)                     # folded rows needed
    tile_f = _choose_tile_f(nf_raw, Ef)
    nf_pad = _round_up(nf_raw, tile_f)
    n_pad = nf_pad * g
    grid = (nf_pad // tile_f,)

    # ---- host/XLA-side prep (tiny, one-off) -----------------------------
    tau_flat = tau.reshape(-1).astype(jnp.float32)
    if n_pad != N:
        tau_flat = jnp.concatenate(
            [tau_flat, jnp.zeros((n_pad - N,), jnp.float32)])
    tau_fold = tau_flat.reshape(nf_pad, g)

    w1 = w1.astype(jnp.float32)
    b1 = b1.reshape(1, H1).astype(jnp.float32)
    w2 = w2.astype(jnp.float32)
    b2 = b2.reshape(1, E).astype(jnp.float32)
    if E_pad != E:                          # pad feature dim -> lane-dense out
        w2 = jnp.pad(w2, ((0, 0), (0, E_pad - E)))
        b2 = jnp.pad(b2, ((0, 0), (0, E_pad - E)))
    if g > 1:
        eye = jnp.eye(g, dtype=jnp.float32)
        w1b = jnp.kron(eye, w1)             # (g, g*H1)
        w2b = jnp.kron(eye, w2)             # (g*H1, Ef)
        b1b = jnp.tile(b1, (1, g))          # (1, g*H1)
        b2b = jnp.tile(b2, (1, g))          # (1, Ef)
    else:
        w1b, b1b, w2b, b2b = w1, b1, w2, b2

    cost = pl.CostEstimate(
        flops=2 * N * H1 * (1 + E),
        transcendentals=N * (H1 + E),
        bytes_accessed=4 * (N + N * E + H1 * (1 + E) + H1 + E),
    )

    kernel = functools.partial(_tau_encoder_kernel,
                               approximate=approximate_gelu)

    out_fold = pl.pallas_call(
        kernel,
        out_shape=jax.ShapeDtypeStruct((nf_pad, Ef), out_dtype),
        grid_spec=pl.GridSpec(
            grid=grid,
            in_specs=[
                pl.BlockSpec((tile_f, g), lambda i: (i, 0)),
                pl.BlockSpec((g, Hf), lambda i: (0, 0)),
                pl.BlockSpec((1, Hf), lambda i: (0, 0)),
                pl.BlockSpec((Hf, Ef), lambda i: (0, 0)),
                pl.BlockSpec((1, Ef), lambda i: (0, 0)),
            ],
            out_specs=pl.BlockSpec((tile_f, Ef), lambda i: (i, 0)),
        ),
        compiler_params=pltpu.CompilerParams(
            dimension_semantics=("parallel",),
            # Tile data is budgeted to <= ~24 MiB, so a 32 MiB scoped limit
            # is safe on every generation (incl. v7x's 64 MiB physical VMEM).
            vmem_limit_bytes=32 * 1024 * 1024,
        ),
        cost_estimate=cost,
    )(tau_fold, w1b, b1b, w2b, b2b)

    # Folded rows hold g consecutive flat rows (row-major view change), then
    # drop the padded rows / padded feature columns.
    out = out_fold.reshape(n_pad, E_pad)[:N, :E]
    return out.reshape(B, D, E)


def _reference(tau, w1, b1, w2, b2):
    B, D = tau.shape
    x = tau.reshape(B * D, 1)
    h = jax.nn.gelu(x @ w1 + b1, approximate=False)
    y = jax.nn.gelu(h @ w2 + b2, approximate=False)
    return y.reshape(B, D, -1)


def _make_params(key, embed_dim):
    hidden = embed_dim // 2
    k_w1, k_b1, k_w2, k_b2 = jax.random.split(key, 4)
    bound1 = 1.0 / math.sqrt(1.0)
    w1 = jax.random.uniform(k_w1, (1, hidden), jnp.float32, -bound1, bound1)
    b1 = jax.random.uniform(k_b1, (hidden,), jnp.float32, -bound1, bound1)
    bound2 = 1.0 / math.sqrt(hidden)
    w2 = jax.random.uniform(k_w2, (hidden, embed_dim), jnp.float32, -bound2, bound2)
    b2 = jax.random.uniform(k_b2, (embed_dim,), jnp.float32, -bound2, bound2)
    return w1, b1, w2, b2


if __name__ == "__main__":
    key = jax.random.PRNGKey(0)
    k1, k2, k3, k4 = jax.random.split(key, 4)

    # Config 1: small shapes (batch=2, depth_points=16, embed_dim=32), g=4.
    batch, depth_points, embed_dim = 2, 16, 32
    tau = jax.random.normal(k1, (batch, depth_points), dtype=jnp.float32)
    w1, b1, w2, b2 = _make_params(k2, embed_dim)
    out = jax.block_until_ready(tau_position_encoder(tau, w1, b1, w2, b2))
    ref = _reference(tau, w1, b1, w2, b2)
    assert out.shape == (batch, depth_points, embed_dim)
    assert jnp.allclose(out, ref, atol=1e-5, rtol=1e-5), "mismatch (config 1)"

    # Config 2: module defaults (embed_dim=64, depth_points=80) — exercises
    # row padding, a multi-step "parallel" grid, and lane-folding with g=2.
    batch2, depth2, embed2 = 4, 80, 64
    tau2 = jax.random.normal(k3, (batch2, depth2), dtype=jnp.float32)
    p2 = _make_params(k4, embed2)
    out2 = jax.block_until_ready(tau_position_encoder(tau2, *p2))
    ref2 = _reference(tau2, *p2)
    assert out2.shape == (batch2, depth2, embed2)
    assert jnp.allclose(out2, ref2, atol=1e-5, rtol=1e-5), "mismatch (config 2)"

    print("KERNEL_OK")
</pallas_src>

<mosaic_0001>
module attributes {stable_mosaic.version = 11 : i64} {
  func.func @_tau_encoder_kernel(%arg0: i32, %arg1: memref<8x4xf32, #tpu.memory_space<vmem>>, %arg2: memref<4x64xf32, #tpu.memory_space<vmem>>, %arg3: memref<1x64xf32, #tpu.memory_space<vmem>>, %arg4: memref<64x128xf32, #tpu.memory_space<vmem>>, %arg5: memref<1x128xf32, #tpu.memory_space<vmem>>, %arg6: memref<8x128xf32, #tpu.memory_space<vmem>>) attributes {dimension_semantics = [#tpu.dimension_semantics<parallel>], iteration_bounds = array<i64: 1>, scalar_prefetch = 0 : i64, scratch_operands = 0 : i64, tpu.core_type = #tpu.core_type<tc>, window_params = [{transform_indices = @transform_0, window_bounds = array<i64: 8, 4>}, {pipeline_mode = #tpu.pipeline_mode<synchronous>, transform_indices = @transform_1, window_bounds = array<i64: 4, 64>}, {pipeline_mode = #tpu.pipeline_mode<synchronous>, transform_indices = @transform_2, window_bounds = array<i64: 1, 64>}, {pipeline_mode = #tpu.pipeline_mode<synchronous>, transform_indices = @transform_3, window_bounds = array<i64: 64, 128>}, {pipeline_mode = #tpu.pipeline_mode<synchronous>, transform_indices = @transform_4, window_bounds = array<i64: 1, 128>}, {transform_indices = @transform_5, window_bounds = array<i64: 8, 128>}]} {
    %c0 = arith.constant 0 : index
    %c0_0 = arith.constant 0 : index
    %0 = vector.load %arg1[%c0, %c0_0] : memref<8x4xf32, #tpu.memory_space<vmem>>, vector<8x4xf32>
    %c0_1 = arith.constant 0 : index
    %c0_2 = arith.constant 0 : index
    %1 = vector.load %arg2[%c0_1, %c0_2] : memref<4x64xf32, #tpu.memory_space<vmem>>, vector<4x64xf32>
    %cst = arith.constant dense<0.000000e+00> : vector<8x64xf32>
    %2 = tpu.matmul %0, %1, %cst {dimension_numbers = #tpu.dot_dimension_numbers<[1], [0], [0], [1], [0, 0, 1, 1], [], []>} : vector<8x4xf32>, vector<4x64xf32>, vector<8x64xf32> -> vector<8x64xf32>
    %c0_3 = arith.constant 0 : index
    %c0_4 = arith.constant 0 : index
    %3 = vector.load %arg3[%c0_3, %c0_4] : memref<1x64xf32, #tpu.memory_space<vmem>>, vector<1x64xf32>
    %4 = vector.broadcast %3 : vector<1x64xf32> to vector<8x64xf32>
    %5 = arith.addf %2, %4 : vector<8x64xf32>
    %cst_5 = arith.constant 5.000000e-01 : f32
    %6 = vector.broadcast %cst_5 : f32 to vector<8x64xf32>
    %7 = arith.mulf %6, %5 : vector<8x64xf32>
    %cst_6 = arith.constant 0.707106769 : f32
    %8 = vector.broadcast %cst_6 : f32 to vector<8x64xf32>
    %9 = arith.mulf %5, %8 : vector<8x64xf32>
    %10 = math.erf %9 : vector<8x64xf32>
    %cst_7 = arith.constant 1.000000e+00 : f32
    %11 = vector.broadcast %cst_7 : f32 to vector<8x64xf32>
    %12 = arith.addf %11, %10 : vector<8x64xf32>
    %13 = arith.mulf %7, %12 : vector<8x64xf32>
    %c0_8 = arith.constant 0 : index
    %c0_9 = arith.constant 0 : index
    %14 = vector.load %arg4[%c0_8, %c0_9] : memref<64x128xf32, #tpu.memory_space<vmem>>, vector<64x128xf32>
    %cst_10 = arith.constant dense<0.000000e+00> : vector<8x128xf32>
    %15 = tpu.matmul %13, %14, %cst_10 {dimension_numbers = #tpu.dot_dimension_numbers<[1], [0], [0], [1], [0, 0, 1, 1], [], []>} : vector<8x64xf32>, vector<64x128xf32>, vector<8x128xf32> -> vector<8x128xf32>
    %c0_11 = arith.constant 0 : index
    %c0_12 = arith.constant 0 : index
    %16 = vector.load %arg5[%c0_11, %c0_12] : memref<1x128xf32, #tpu.memory_space<vmem>>, vector<1x128xf32>
    %17 = vector.broadcast %16 : vector<1x128xf32> to vector<8x128xf32>
    %18 = arith.addf %15, %17 : vector<8x128xf32>
    %cst_13 = arith.constant 5.000000e-01 : f32
    %19 = vector.broadcast %cst_13 : f32 to vector<8x128xf32>
    %20 = arith.mulf %19, %18 : vector<8x128xf32>
    %cst_14 = arith.constant 0.707106769 : f32
    %21 = vector.broadcast %cst_14 : f32 to vector<8x128xf32>
    %22 = arith.mulf %18, %21 : vector<8x128xf32>
    %23 = math.erf %22 : vector<8x128xf32>
    %cst_15 = arith.constant 1.000000e+00 : f32
    %24 = vector.broadcast %cst_15 : f32 to vector<8x128xf32>
    %25 = arith.addf %24, %23 : vector<8x128xf32>
    %26 = arith.mulf %20, %25 : vector<8x128xf32>
    %c0_16 = arith.constant 0 : index
    %c0_17 = arith.constant 0 : index
    %27 = vector.load %arg6[%c0_16, %c0_17] : memref<8x128xf32, #tpu.memory_space<vmem>>, vector<8x128xf32>
    tpu.vector_store %arg6[%c0_16, %c0_17], %26 {strides = array<i32>} : memref<8x128xf32, #tpu.memory_space<vmem>>, vector<8x128xf32>,
    return
  }
  func.func @transform_0(%arg0: i32) -> (i32, i32) {
    %c0_i32 = arith.constant 0 : i32
    %c0_i32_0 = arith.constant 0 : i32
    return %arg0, %c0_i32 : i32, i32
  }
  func.func @transform_1(%arg0: i32) -> (i32, i32) {
    %c0_i32 = arith.constant 0 : i32
    %c0_i32_0 = arith.constant 0 : i32
    %c0_i32_1 = arith.constant 0 : i32
    return %c0_i32, %c0_i32_0 : i32, i32
  }
  func.func @transform_2(%arg0: i32) -> (i32, i32) {
    %c0_i32 = arith.constant 0 : i32
    %c0_i32_0 = arith.constant 0 : i32
    %c0_i32_1 = arith.constant 0 : i32
    return %c0_i32, %c0_i32_0 : i32, i32
  }
  func.func @transform_3(%arg0: i32) -> (i32, i32) {
    %c0_i32 = arith.constant 0 : i32
    %c0_i32_0 = arith.constant 0 : i32
    %c0_i32_1 = arith.constant 0 : i32
    return %c0_i32, %c0_i32_0 : i32, i32
  }
  func.func @transform_4(%arg0: i32) -> (i32, i32) {
    %c0_i32 = arith.constant 0 : i32
    %c0_i32_0 = arith.constant 0 : i32
    %c0_i32_1 = arith.constant 0 : i32
    return %c0_i32, %c0_i32_0 : i32, i32
  }
  func.func @transform_5(%arg0: i32) -> (i32, i32) {
    %c0_i32 = arith.constant 0 : i32
    %c0_i32_0 = arith.constant 0 : i32
    return %arg0, %c0_i32 : i32, i32
  }
}

</mosaic_0001>

<bundles_post_ra>
// kernel: tpu_custom_call.1
= control target key start
LH: loop header
LB: loop body
LE: loop exit
PB: predicated region body
PF: predicated region fallthrough
CT: control target
= control target key end

     0   :  { %10 = vsyncpa [#allocation3], 0  ;;  %s332_s0 = inlined_call_operand.vmem [shape: f32[8,4], index: 0, kind: input, shape index: {}]   ;;  %s333_s1 = inlined_call_operand.vmem [shape: f32[4,64], index: 1, kind: input, shape index: {}]   ;;  %s334_s2 = inlined_call_operand.vmem [shape: f32[1,64], index: 2, kind: input, shape index: {}]   ;;  %s335_s3 = inlined_call_operand.hbm [shape: f32[64,128], index: 3, kind: input, shape index: {}]   ;;  %s336_s4 = inlined_call_operand.vmem [shape: f32[1,128], index: 4, kind: input, shape index: {}]   ;;  %s337_s5 = inlined_call_operand.hbm [shape: f32[8,128], index: 5, kind: output, shape index: {}]  }
   0x1   :  { %11 = vsyncpa [#allocation4], 0  ;;  %s22_s20 = sshll.u32 %s335_s3, 4  ;;  %s280_s21 = smov [#allocation2]   ;;  %s23_s20 = int_to_ptr.hbm [resolvable:$true] %s22_s20 }
   0x2   :  { %s24_s22 = sshll.u32 %s280_s21, 4  ;;  %s281_s23 = smov 128   ;;  %s25_s22 = int_to_ptr.vmem [resolvable:$true] %s24_s22 }
   0x3   :  { %s282_s24 = smov 8  }
   0x4   :  { %30 = dma.hbm_to_vmem [thread:$0]  %s23_s20, 1024, %s25_s22, [#allocation3], %s281_s23, %s281_s23, %s282_s24  }
   0x5   :  { %276 = dma.done.wait [#allocation3], 1024  }
   0x6   :  { %277 = vsyncadd [#allocation3], 4294966272  ;;  %vm47_vm0 = vcmask 1043456   ;;  %vm43_vm1 = vcmask 31744   ;;  %v38_v0 = vld [vmem:[%s333_s1] sm:$0xf] }
   0x7   :  { %v37_v1 = vld [vmem:[%s332_s0] sm:$0xff]  ;;  %213 = vmatpush.msk.msra.mxu0 %vm47_vm0, %v38_v0  ;;  %v122_v8 = vld [vmem:[#allocation2 + $0x38] sm:$0xff]  ;;  %v121_v11 = vld [vmem:[#allocation2 + $0x30] sm:$0xff]  ;;  %vm127_vm6 = vcmask 523264   ;;  %s203_s7 = sshll.u32 %s337_s5, 4  ;;  %s204_s7 = int_to_ptr.hbm [resolvable:$true] %s203_s7 }
   0x8   :  { %214 = vmatmul.msk.f32.vlgmr.msra.gmra.mxu0 %vm43_vm1, %v37_v1  ;;  %v222_v2 = vld [vmem:[%s334_s2] ss:$0 sm:$0xff]  ;;  %139 = vmatpush.msra.mxu1 %v122_v8  ;;  %v120_v14 = vld [vmem:[#allocation2 + $0x28] sm:$0xff]  ;;  %v118_v18 = vld [vmem:[#allocation2 + $0x18] sm:$0xff]  ;;  %s283_s2 = smov [#allocation5]  }
   0x9   :  { %v119_v17 = vld [vmem:[#allocation2 + $0x20] sm:$0xff]  ;;  %v117_v20 = vld [vmem:[#allocation2 + $0x10] sm:$0xff]  ;;  %v116_v23 = vld [vmem:[#allocation2 + $0x8] sm:$0xff] }
   0xa   :  { %140 = vmatpush.msra.mxu1 %v121_v11  ;;  %v115_v25 = vld [vmem:[#allocation2] sm:$0xff] }
   0xb   :  { %v223_v52 = vld [vmem:[%s336_s4] ss:$0 sm:$0xff]  ;;  %s201_s4 = sshll.u32 %s283_s2, 4  ;;  %s202_s4 = int_to_ptr.vmem [resolvable:$true] %s201_s4 }
   0xc   :  { %141 = vmatpush.msra.mxu1 %v120_v14 }
   0xe   :  { %142 = vmatpush.msra.mxu1 %v119_v17 }
  0x10   :  { %143 = vmatpush.msra.mxu1 %v118_v18 }
  0x12   :  { %144 = vmatpush.msra.mxu1 %v117_v20 }
  0x14   :  { %145 = vmatpush.msra.mxu1 %v116_v23 }
  0x16   :  { %146 = vmatpush.msra.mxu1 %v115_v25 }
  0x85   :  { %v68_v3 = vpop.f32.mrf.mxu0 }
  0x86   :  { %v69_v4 = vadd.f32 %v222_v2, %v68_v3 }
  0x88   :  { %v72_v5 = vmul.f32 0.70710677, %v69_v4  ;;  %v71_v49 = vmul.f32 0.5, %v69_v4 }
  0x8a   :  { %v73_v6 = vmul.f32 %v72_v5, %v72_v5 }
  0x8c   :  { %v74_v7 = vmin.f32 %v73_v6, 16.0 }
  0x8e   :  { %v75_v9 = vmul.f32 2.1237322e-06, %v74_v7  ;;  %v86_v10 = vmul.f32 3.8918573e-05, %v74_v7 }
  0x90   :  { %v76_v12 = vadd.f32 0.00028619796, %v75_v9  ;;  %v87_v13 = vadd.f32 0.001143296, %v86_v10 }
  0x92   :  { %v77_v15 = vmul.f32 %v76_v12, %v74_v7  ;;  %v88_v16 = vmul.f32 %v87_v13, %v74_v7 }
  0x94   :  { %v89_v19 = vadd.f32 0.014752088, %v88_v16  ;;  %v78_v21 = vadd.f32 0.0036580483, %v77_v15 }
  0x96   :  { %v90_v22 = vmul.f32 %v89_v19, %v74_v7  ;;  %v79_v26 = vmul.f32 %v78_v21, %v74_v7 }
  0x98   :  { %v91_v24 = vadd.f32 0.112945676, %v90_v22  ;;  %v80_v29 = vadd.f32 0.05243302, %v79_v26 }
  0x9a   :  { %v92_v27 = vmul.f32 %v91_v24, %v74_v7  ;;  %v81_v32 = vmul.f32 %v80_v29, %v74_v7 }
  0x9c   :  { %v93_v28 = vadd.f32 0.4994258, %v92_v27  ;;  %v82_v33 = vadd.f32 0.18741608, %v81_v32 }
  0x9e   :  { %v94_v30 = vmul.f32 %v93_v28, %v74_v7  ;;  %v83_v35 = vmul.f32 %v82_v33, %v74_v7 }
  0xa0   :  { %v95_v31 = vadd.f32 1.0, %v94_v30  ;;  %v84_v39 = vadd.f32 1.1283791, %v83_v35 }
  0xa2   :  { %224 = vrcp.f32 %v95_v31  ;;  %v107_v38 = vand.u32 2147483648, %v95_v31  ;;  %v105_v41 = vand.u32 2147483647, %v95_v31  ;;  %vm101_vm3 = vweird.f32 %v95_v31 }
  0xa3   :  { %v85_v44 = vmul.f32 %v84_v39, %v72_v5 }
  0xa4   :  { %v108_v43 = vor.u32 1.1754944e-38, %v107_v38  ;;  %vm106_vm5 = vcmp.eq.f32.partialorder %v105_v41, 8.507059e+37 }
  0xa8   :  { %v225_v34 = vpop.eup %224 }
  0xa9   :  { %v97_v36 = vmul.f32 %v225_v34, %v95_v31  ;;  %vm102_vm2 = vweird.f32 %v225_v34 }
  0xaa   :  { %vm103_vm4 = vmor %vm101_vm3, %vm102_vm2 }
  0xab   :  { %v98_v37 = vsub.f32 1.0, %v97_v36 }
  0xad   :  { %v99_v40 = vmul.f32 %v225_v34, %v98_v37 }
  0xaf   :  { %v100_v42 = vadd.f32 %v225_v34, %v99_v40 }
  0xb1   :  { %v104_v45 = vsel %vm103_vm4, %v225_v34, %v100_v42 }
  0xb2   :  { %v109_v46 = vsel %vm106_vm5, %v108_v43, %v104_v45 }
  0xb3   :  { %v110_v47 = vmul.f32 %v109_v46, %v85_v44 }
  0xb5   :  { %v215_v48 = vclamps-f32 %v110_v47, 1.0 }
  0xb7   :  { %v113_v50 = vadd.f32 1.0, %v215_v48 }
  0xb9   :  { %v114_v51 = vmul.f32 %v113_v50, %v71_v49 }
  0xbb   :  { %216 = vmatmul.msk.f32.vlgmr.msra.gmra.mxu1 %vm127_vm6, %v114_v51 }
 0x138   :  { %v148_v53 = vpop.f32.mrf.mxu1 }
 0x139   :  { %v149_v54 = vadd.f32 %v223_v52, %v148_v53 }
 0x13b   :  { %v152_v55 = vmul.f32 0.70710677, %v149_v54  ;;  %v151_v27 = vmul.f32 0.5, %v149_v54 }
 0x13d   :  { %v153_v56 = vmul.f32 %v152_v55, %v152_v55 }
 0x13f   :  { %v154_v57 = vmin.f32 %v153_v56, 16.0 }
 0x141   :  { %v155_v58 = vmul.f32 2.1237322e-06, %v154_v57  ;;  %v166_v59 = vmul.f32 3.8918573e-05, %v154_v57 }
 0x143   :  { %v156_v60 = vadd.f32 0.00028619796, %v155_v58  ;;  %v167_v61 = vadd.f32 0.001143296, %v166_v59 }
 0x145   :  { %v157_v62 = vmul.f32 %v156_v60, %v154_v57  ;;  %v168_v63 = vmul.f32 %v167_v61, %v154_v57 }
 0x147   :  { %v169_v0 = vadd.f32 0.014752088, %v168_v63  ;;  %v158_v1 = vadd.f32 0.0036580483, %v157_v62 }
 0x149   :  { %v170_v2 = vmul.f32 %v169_v0, %v154_v57  ;;  %v159_v4 = vmul.f32 %v158_v1, %v154_v57 }
 0x14b   :  { %v171_v3 = vadd.f32 0.112945676, %v170_v2  ;;  %v160_v7 = vadd.f32 0.05243302, %v159_v4 }
 0x14d   :  { %v172_v5 = vmul.f32 %v171_v3, %v154_v57  ;;  %v161_v10 = vmul.f32 %v160_v7, %v154_v57 }
 0x14f   :  { %v173_v6 = vadd.f32 0.4994258, %v172_v5  ;;  %v162_v11 = vadd.f32 0.18741608, %v161_v10 }
 0x151   :  { %v174_v8 = vmul.f32 %v173_v6, %v154_v57  ;;  %v163_v13 = vmul.f32 %v162_v11, %v154_v57 }
 0x153   :  { %v175_v9 = vadd.f32 1.0, %v174_v8  ;;  %v164_v17 = vadd.f32 1.1283791, %v163_v13 }
 0x155   :  { %226 = vrcp.f32 %v175_v9  ;;  %v187_v16 = vand.u32 2147483648, %v175_v9  ;;  %v185_v19 = vand.u32 2147483647, %v175_v9  ;;  %vm181_vm8 = vweird.f32 %v175_v9 }
 0x156   :  { %v165_v22 = vmul.f32 %v164_v17, %v152_v55 }
 0x157   :  { %v188_v21 = vor.u32 1.1754944e-38, %v187_v16  ;;  %vm186_vm10 = vcmp.eq.f32.partialorder %v185_v19, 8.507059e+37 }
 0x15b   :  { %v227_v12 = vpop.eup %226 }
 0x15c   :  { %v177_v14 = vmul.f32 %v227_v12, %v175_v9  ;;  %vm182_vm7 = vweird.f32 %v227_v12 }
 0x15d   :  { %vm183_vm9 = vmor %vm181_vm8, %vm182_vm7 }
 0x15e   :  { %v178_v15 = vsub.f32 1.0, %v177_v14 }
 0x160   :  { %v179_v18 = vmul.f32 %v227_v12, %v178_v15 }
 0x162   :  { %v180_v20 = vadd.f32 %v227_v12, %v179_v18 }
 0x164   :  { %v184_v23 = vsel %vm183_vm9, %v227_v12, %v180_v20 }
 0x165   :  { %v189_v24 = vsel %vm186_vm10, %v188_v21, %v184_v23 }
 0x166   :  { %v190_v25 = vmul.f32 %v189_v24, %v165_v22 }
 0x168   :  { %v217_v26 = vclamps-f32 %v190_v25, 1.0 }
 0x16a   :  { %v193_v28 = vadd.f32 1.0, %v217_v26 }
 0x16c   :  { %v194_v29 = vmul.f32 %v193_v28, %v151_v27 }
 0x16e   :  { %195 = vst [vmem:[#allocation5] sm:$0xff] %v194_v29 }
 0x16f   :  { %206 = dma.vmem_to_hbm [thread:$0]  %s202_s4, 128, %s204_s7, [#allocation4]  }
 0x170   :  { %278 = dma.done.wait [#allocation4], 128  }
 0x171   :  { %279 = vsyncadd [#allocation4], 4294967168 }
 0x172   :  { %211 = vsyncpa [#allocation3], 1 }
 0x173   :  { %212 = vsyncpa [#allocation4], 1 }

</bundles_post_ra>
